<compile_context>
chip_gen: v7x
topology: tpu7x:2x2x1
jax: 0.10.0
libtpu: 0.0.40
codegen_flags: <defaults>
</compile_context>

<pallas_src>
import jax
import jax.numpy as jnp
from jax.experimental import pallas as pl
from jax.experimental.pallas import tpu as pltpu


def _cubic_squash_kernel(x_ref, slope_ref, bias_ref, inv_scale_ref,
                         c1_ref, c3_ref, o_ref):
    x = x_ref[...].astype(jnp.float32)          # (W, tn)
    slope = slope_ref[...]                      # (W, 1) f32
    bias = bias_ref[...]                        # (W, 1) f32
    inv_scale = inv_scale_ref[...]              # (W, 1) f32 = 1/scale
    c1 = c1_ref[...]                            # (W, 1) f32 = 1.5*scale
    c3 = c3_ref[...]                            # (W, 1) f32 = 0.5*scale
    u = jnp.clip((x * slope - bias) * inv_scale, -1.0, 1.0)
    # scale * (1.5*u - 0.5*u^3) with scale folded into c1/c3 (Horner form).
    o_ref[...] = (u * (c1 - c3 * (u * u))).astype(o_ref.dtype)


def cubic_squash(x, slope, bias, scale, *,
                 tn=None,
                 per_tile_budget_bytes=4 << 20,
                 vmem_limit_bytes=32 << 20):
    """x: (width, N); slope/bias/scale: (width,).

    Computes scale * (1.5*u - 0.5*u^3) with
    u = clip((x*slope - bias)/scale, -1, 1),
    identical to PyTorch CubicSquashActivation.forward.
    """
    W, N = x.shape
    f32 = jnp.float32

    # Per-width params, always f32 (do NOT quantize to activation dtype).
    scale_f = scale.astype(f32)
    slope_p = slope.astype(f32).reshape(W, 1)
    bias_p = bias.astype(f32).reshape(W, 1)
    inv_scale_p = (1.0 / scale_f).reshape(W, 1)
    c1_p = (1.5 * scale_f).reshape(W, 1)
    c3_p = (0.5 * scale_f).reshape(W, 1)

    # Column tile: full width per block, lane-dense slab. Budget accounts for
    # double-buffering: resident VMEM ~= 2*(in tile) + 2*(out tile) + params
    # ~= 4 * per_tile_budget_bytes, kept well under vmem_limit_bytes.
    itemsize = jnp.dtype(x.dtype).itemsize
    bytes_per_col = W * itemsize
    budget_tn = max(128, (per_tile_budget_bytes // bytes_per_col) // 128 * 128)
    if tn is None:
        tn = budget_tn
    else:
        tn = max(128, (tn // 128) * 128)
        tn = min(tn, budget_tn)

    if tn >= N:
        if N >= 256:
            # Keep >= 2 lane-aligned column blocks so both v7x TensorCores and
            # the DMA/compute pipeline are used (single-step grid = no overlap).
            tn = max(128, ((pl.cdiv(N, 2) + 127) // 128) * 128)
        else:
            tn = N                               # full-dim block is always legal
    grid = (pl.cdiv(N, tn),)                     # ragged tail masked by Pallas

    x_spec = pl.BlockSpec((W, tn), lambda j: (0, j))
    # Params: resident in VMEM, same (only) block for every grid step.
    param_spec = pl.BlockSpec((W, 1), lambda j: (0, 0))

    return pl.pallas_call(
        _cubic_squash_kernel,
        out_shape=jax.ShapeDtypeStruct((W, N), x.dtype),
        grid=grid,
        in_specs=[x_spec, param_spec, param_spec, param_spec,
                  param_spec, param_spec],
        out_specs=pl.BlockSpec((W, tn), lambda j: (0, j)),
        compiler_params=pltpu.CompilerParams(
            dimension_semantics=("parallel",),
            vmem_limit_bytes=vmem_limit_bytes,
        ),
    )(x, slope_p, bias_p, inv_scale_p, c1_p, c3_p)


def reference(x, slope, bias, scale):
    u = jnp.clip((x * slope[:, None] - bias[:, None]) / scale[:, None], -1.0, 1.0)
    return scale[:, None] * (1.5 * u - 0.5 * u ** 3)


if __name__ == "__main__":
    # Synthetic, deterministic init mirroring the PyTorch __init__.
    width, n_cols = 32, 512
    eps = 0.001
    key = jax.random.PRNGKey(0)
    k_bias, k_slope, k_scale, k_x = jax.random.split(key, 4)

    bias = jax.random.uniform(k_bias, (width,), jnp.float32) * 2 * eps - eps
    slope = jax.random.uniform(k_slope, (width,), jnp.float32) * 2 * eps - eps + 1.0
    # torch.rand() draws scale in [0, 1). The kernel no longer folds slope/scale
    # (so tiny scale is numerically safe); the lower bound here only keeps the
    # synthetic reference comparison well-conditioned for tight tolerances.
    scale = jax.random.uniform(k_scale, (width,), jnp.float32, minval=0.1, maxval=1.0)

    x = jax.random.normal(k_x, (width, n_cols), jnp.float32)

    out = cubic_squash(x, slope, bias, scale)
    out = jax.block_until_ready(out)

    ref = reference(x, slope, bias, scale)
    assert out.shape == ref.shape and out.dtype == ref.dtype
    assert jnp.allclose(out, ref, atol=1e-5, rtol=1e-5)

    print("KERNEL_OK")
</pallas_src>

<mosaic_0001>
module attributes {stable_mosaic.version = 11 : i64} {
  func.func @_cubic_squash_kernel(%arg0: i32, %arg1: memref<32x256xf32, #tpu.memory_space<vmem>>, %arg2: memref<32x1xf32, #tpu.memory_space<vmem>>, %arg3: memref<32x1xf32, #tpu.memory_space<vmem>>, %arg4: memref<32x1xf32, #tpu.memory_space<vmem>>, %arg5: memref<32x1xf32, #tpu.memory_space<vmem>>, %arg6: memref<32x1xf32, #tpu.memory_space<vmem>>, %arg7: memref<32x256xf32, #tpu.memory_space<vmem>>) attributes {dimension_semantics = [#tpu.dimension_semantics<parallel>], iteration_bounds = array<i64: 2>, scalar_prefetch = 0 : i64, scratch_operands = 0 : i64, tpu.core_type = #tpu.core_type<tc>, window_params = [{transform_indices = @transform_0, window_bounds = array<i64: 32, 256>}, {pipeline_mode = #tpu.pipeline_mode<synchronous>, transform_indices = @transform_1, window_bounds = array<i64: 32, 1>}, {pipeline_mode = #tpu.pipeline_mode<synchronous>, transform_indices = @transform_2, window_bounds = array<i64: 32, 1>}, {pipeline_mode = #tpu.pipeline_mode<synchronous>, transform_indices = @transform_3, window_bounds = array<i64: 32, 1>}, {pipeline_mode = #tpu.pipeline_mode<synchronous>, transform_indices = @transform_4, window_bounds = array<i64: 32, 1>}, {pipeline_mode = #tpu.pipeline_mode<synchronous>, transform_indices = @transform_5, window_bounds = array<i64: 32, 1>}, {transform_indices = @transform_6, window_bounds = array<i64: 32, 256>}]} {
    %c0 = arith.constant 0 : index
    %c0_0 = arith.constant 0 : index
    %0 = vector.load %arg1[%c0, %c0_0] : memref<32x256xf32, #tpu.memory_space<vmem>>, vector<32x256xf32>
    %c0_1 = arith.constant 0 : index
    %c0_2 = arith.constant 0 : index
    %1 = vector.load %arg2[%c0_1, %c0_2] : memref<32x1xf32, #tpu.memory_space<vmem>>, vector<32x1xf32>
    %c0_3 = arith.constant 0 : index
    %c0_4 = arith.constant 0 : index
    %2 = vector.load %arg3[%c0_3, %c0_4] : memref<32x1xf32, #tpu.memory_space<vmem>>, vector<32x1xf32>
    %c0_5 = arith.constant 0 : index
    %c0_6 = arith.constant 0 : index
    %3 = vector.load %arg4[%c0_5, %c0_6] : memref<32x1xf32, #tpu.memory_space<vmem>>, vector<32x1xf32>
    %c0_7 = arith.constant 0 : index
    %c0_8 = arith.constant 0 : index
    %4 = vector.load %arg5[%c0_7, %c0_8] : memref<32x1xf32, #tpu.memory_space<vmem>>, vector<32x1xf32>
    %c0_9 = arith.constant 0 : index
    %c0_10 = arith.constant 0 : index
    %5 = vector.load %arg6[%c0_9, %c0_10] : memref<32x1xf32, #tpu.memory_space<vmem>>, vector<32x1xf32>
    %6 = vector.broadcast %1 : vector<32x1xf32> to vector<32x256xf32>
    %7 = arith.mulf %0, %6 : vector<32x256xf32>
    %8 = vector.broadcast %2 : vector<32x1xf32> to vector<32x256xf32>
    %9 = arith.subf %7, %8 : vector<32x256xf32>
    %10 = vector.broadcast %3 : vector<32x1xf32> to vector<32x256xf32>
    %11 = arith.mulf %9, %10 : vector<32x256xf32>
    %cst = arith.constant -1.000000e+00 : f32
    %cst_11 = arith.constant 1.000000e+00 : f32
    %12 = vector.broadcast %cst : f32 to vector<32x256xf32>
    %13 = arith.maximumf %12, %11 : vector<32x256xf32>
    %14 = vector.broadcast %cst_11 : f32 to vector<32x256xf32>
    %15 = arith.minimumf %14, %13 : vector<32x256xf32>
    %16 = arith.mulf %15, %15 : vector<32x256xf32>
    %17 = vector.broadcast %5 : vector<32x1xf32> to vector<32x256xf32>
    %18 = arith.mulf %17, %16 : vector<32x256xf32>
    %19 = vector.broadcast %4 : vector<32x1xf32> to vector<32x256xf32>
    %20 = arith.subf %19, %18 : vector<32x256xf32>
    %21 = arith.mulf %15, %20 : vector<32x256xf32>
    %c0_12 = arith.constant 0 : index
    %c0_13 = arith.constant 0 : index
    %22 = vector.load %arg7[%c0_12, %c0_13] : memref<32x256xf32, #tpu.memory_space<vmem>>, vector<32x256xf32>
    tpu.vector_store %arg7[%c0_12, %c0_13], %21 {strides = array<i32>} : memref<32x256xf32, #tpu.memory_space<vmem>>, vector<32x256xf32>,
    return
  }
  func.func @transform_0(%arg0: i32) -> (i32, i32) {
    %c0_i32 = arith.constant 0 : i32
    %c0_i32_0 = arith.constant 0 : i32
    return %c0_i32, %arg0 : i32, i32
  }
  func.func @transform_1(%arg0: i32) -> (i32, i32) {
    %c0_i32 = arith.constant 0 : i32
    %c0_i32_0 = arith.constant 0 : i32
    %c0_i32_1 = arith.constant 0 : i32
    return %c0_i32, %c0_i32_0 : i32, i32
  }
  func.func @transform_2(%arg0: i32) -> (i32, i32) {
    %c0_i32 = arith.constant 0 : i32
    %c0_i32_0 = arith.constant 0 : i32
    %c0_i32_1 = arith.constant 0 : i32
    return %c0_i32, %c0_i32_0 : i32, i32
  }
  func.func @transform_3(%arg0: i32) -> (i32, i32) {
    %c0_i32 = arith.constant 0 : i32
    %c0_i32_0 = arith.constant 0 : i32
    %c0_i32_1 = arith.constant 0 : i32
    return %c0_i32, %c0_i32_0 : i32, i32
  }
  func.func @transform_4(%arg0: i32) -> (i32, i32) {
    %c0_i32 = arith.constant 0 : i32
    %c0_i32_0 = arith.constant 0 : i32
    %c0_i32_1 = arith.constant 0 : i32
    return %c0_i32, %c0_i32_0 : i32, i32
  }
  func.func @transform_5(%arg0: i32) -> (i32, i32) {
    %c0_i32 = arith.constant 0 : i32
    %c0_i32_0 = arith.constant 0 : i32
    %c0_i32_1 = arith.constant 0 : i32
    return %c0_i32, %c0_i32_0 : i32, i32
  }
  func.func @transform_6(%arg0: i32) -> (i32, i32) {
    %c0_i32 = arith.constant 0 : i32
    %c0_i32_0 = arith.constant 0 : i32
    return %c0_i32, %arg0 : i32, i32
  }
}

</mosaic_0001>

<bundles_post_ra>
// kernel: tpu_custom_call.1
= control target key start
LH: loop header
LB: loop body
LE: loop exit
PB: predicated region body
PF: predicated region fallthrough
CT: control target
= control target key end

     0   :  { %11 = vsyncpa [#allocation4], 0  ;;  %s925_s0 = inlined_call_operand.vmem [shape: f32[32,512], index: 0, kind: input, shape index: {}]   ;;  %s926_s1 = inlined_call_operand.vmem [shape: f32[32,1], index: 1, kind: input, shape index: {}]   ;;  %s927_s2 = inlined_call_operand.vmem [shape: f32[32,1], index: 2, kind: input, shape index: {}]   ;;  %s928_s3 = inlined_call_operand.vmem [shape: f32[32,1], index: 3, kind: input, shape index: {}]   ;;  %s929_s4 = inlined_call_operand.vmem [shape: f32[32,1], index: 4, kind: input, shape index: {}]   ;;  %s930_s5 = inlined_call_operand.vmem [shape: f32[32,1], index: 5, kind: input, shape index: {}]   ;;  %s931_s6 = inlined_call_operand.hbm [shape: f32[32,512], index: 6, kind: output, shape index: {}]  }
   0x1   :  { %13 = vsyncpa [#allocation4 + $0x1], 0  ;;  %s749_s21 = smov 0   ;;  %s751_s22 = smov 0  }
   0x2   :  { %s753_s23 = smov 0   ;;  %s755_s24 = smov 0  }
   0x3 LB: > { %s575_s25 = sadd.s32 4294967295, %s707_s24   ;;  %s576_s26 = sadd.s32 4294967294, %s707_s24   ;;  %s707_s24 = sphi %s755_s24, %s937_s24   ;;  %s703_s23 = sphi %s753_s23, %s936_s23   ;;  %s699_s22 = sphi %s751_s22, %s935_s22   ;;  %s695_s21 = sphi %s749_s21, %s934_s21  }
   0x4   : > { %s772_s27 = sadd.s32 1, %s707_s24   ;;  %s26_s28 = sadd.s32 1, %s703_s23 }
   0x5   : > { %s23_s29 = ssub.s32 %s707_s24, %s772_s27  ;;  %p33_p0 = scmp.ne.s32.totalorder %s703_s23, %s699_s22 }
   0x6   : > { %p24_p1 = scmp.eq.s32.totalorder %s23_s29, 0  ;;  %p34_p2 = scmp.eq.s32.totalorder %s707_s24, 0 }
   0x7   : > { %p168_p3 = scmp.eq.s32.totalorder %s575_s25, 1  ;;  %p173_p4 = scmp.ne.s32.totalorder %s699_s22, %s695_s21 }
   0x8   : > { %s785_s30 = scalar_select %p24_p1, %s703_s23, %s26_s28  }
   0x9   : > { %p35_p5 = por %p34_p2, %p33_p0  ;;  %p787_p6 = por %p168_p3, %p33_p0 }
   0xa   : > { %p174_p7 = scmp.eq.s32.totalorder %s576_s26, 1  ;;  %p578_p9 = scmp.ge.s32.totalorder %s707_s24, 2 }
   0xc   : > { %p791_p8 = por %p174_p7, %p173_p4  ;;  %205 = sbr.rel (%p578_p9) target bundleno = 27 (0x1b), region = 36 }
  0x13   : > { %208 = sbr.rel (!%p35_p5) target bundleno = 27 (0x1b), region = 40  ;;  %s210_s9 = sand.u32 (%p35_p5), 1, %s703_s23  }
  0x14   : > { %s598_s10 = sshll.u32 (%p35_p5), %s707_s24, 4  ;;  %s579_s11 = sshll.u32 (%p35_p5), %s210_s9, 6 }
  0x15   : > { %s215_s14 = scalar_lea.vmem (%p35_p5), %s925_s0, %s598_s10  ;;  %s212_s15 = scalar_lea.vmem (%p35_p5), [#allocation2], %s579_s11 }
  0x16   : > { %v228_v0 = vld [vmem:[%s215_s14] sm:$0xff] (%p35_p5)  ;;  %v230_v1 = vld [vmem:[%s215_s14 + $0x8] sm:$0xff] (%p35_p5) }
  0x17   : > { %v232_v2 = vld [vmem:[%s215_s14 + $0x20] sm:$0xff] (%p35_p5)  ;;  %229 = vst [vmem:[%s212_s15] sm:$0xff] (%p35_p5), %v228_v0  ;;  %231 = vst [vmem:[%s212_s15 + $0x8] sm:$0xff] (%p35_p5), %v230_v1  ;;  %v234_v3 = vld [vmem:[%s215_s14 + $0x28] sm:$0xff] (%p35_p5) }
  0x18   : > { %233 = vst [vmem:[%s212_s15 + $0x10] sm:$0xff] (%p35_p5), %v232_v2  ;;  %v236_v4 = vld [vmem:[%s215_s14 + $0x40] sm:$0xff] (%p35_p5)  ;;  %v238_v5 = vld [vmem:[%s215_s14 + $0x48] sm:$0xff] (%p35_p5)  ;;  %235 = vst [vmem:[%s212_s15 + $0x18] sm:$0xff] (%p35_p5), %v234_v3 }
  0x19   : > { %237 = vst [vmem:[%s212_s15 + $0x20] sm:$0xff] (%p35_p5), %v236_v4  ;;  %239 = vst [vmem:[%s212_s15 + $0x28] sm:$0xff] (%p35_p5), %v238_v5  ;;  %v240_v6 = vld [vmem:[%s215_s14 + $0x60] sm:$0xff] (%p35_p5)  ;;  %v242_v7 = vld [vmem:[%s215_s14 + $0x68] sm:$0xff] (%p35_p5) }
  0x1a   : > { %241 = vst [vmem:[%s212_s15 + $0x30] sm:$0xff] %v240_v6  ;;  %243 = vst [vmem:[%s212_s15 + $0x38] sm:$0xff] %v242_v7 }
  0x1b PF: > { %p582_p10 = scmp.ge.s32.totalorder %s707_s24, 1  ;;  %p248_p11 = scmp.lt.s32.totalorder %s707_s24, 3 }
  0x1d   : > { %p249_p12 = pnand %p582_p10, %p248_p11 }
  0x1e   : > { %v296_v8 = vld [vmem:[%s926_s1 + $0x10] sm:$0xff] (!%p249_p12)  ;;  %v294_v9 = vld [vmem:[%s926_s1] sm:$0xff] (!%p249_p12)  ;;  %v709_v10 = vmov (!%p249_p12), 0   ;;  %v297_v11 = vld [vmem:[%s926_s1 + $0x18] sm:$0xff] (!%p249_p12)  ;;  %s255_s11 = sand.u32 (!%p249_p12), 1, %s699_s22   ;;  %s599_s16 = sshll.u32 (!%p249_p12), %s575_s25, 8 }
  0x1f   : > { %252 = sbr.rel (%p249_p12) target bundleno = 217 (0xd9), region = 63  ;;  %644 = vset.pattern.permute.xlu1 (!%p249_p12), %v709_v10  ;;  %643 = vset.pattern.permute.xlu0 (!%p249_p12), %v709_v10  ;;  %v295_v12 = vld [vmem:[%s926_s1 + $0x8] sm:$0xff] (!%p249_p12)  ;;  %v298_v14 = vld [vmem:[%s927_s2] sm:$0xff] (!%p249_p12)  ;;  %v301_v15 = vld [vmem:[%s927_s2 + $0x18] sm:$0xff] (!%p249_p12)  ;;  %s868_s12 = sshll.u32 (!%p249_p12), %s255_s11, 6 }
  0x20   : > { %326 = vperm.xlu1 (!%p249_p12), %644, %v296_v8   ;;  %316 = vperm.xlu0 (!%p249_p12), %643, %v294_v9   ;;  %v299_v13 = vld [vmem:[%s927_s2 + $0x8] sm:$0xff] (!%p249_p12)  ;;  %v300_v16 = vld [vmem:[%s927_s2 + $0x10] sm:$0xff] (!%p249_p12)  ;;  %v302_v18 = vld [vmem:[%s928_s3] sm:$0xff] (!%p249_p12)  ;;  %s257_s13 = scalar_lea.vmem (!%p249_p12), [#allocation2], %s868_s12  ;;  %s283_s14 = scalar_lea.vmem (!%p249_p12), [#allocation3], %s868_s12 }
  0x21   : > { %v303_v17 = vld [vmem:[%s928_s3 + $0x8] sm:$0xff] (!%p249_p12)  ;;  %v305_v19 = vld [vmem:[%s928_s3 + $0x18] sm:$0xff] (!%p249_p12)  ;;  %v304_v20 = vld [vmem:[%s928_s3 + $0x10] sm:$0xff] (!%p249_p12)  ;;  %s508_s15 = sshll.u32 (!%p249_p12), %s283_s14, 4  ;;  %s879_s25 = scalar_lea.hbm (!%p249_p12), %s931_s6, %s599_s16  ;;  %s874_s15 = int_to_ptr.vmem [resolvable:$true] %s508_s15 }
  0x22   : > { %v311_v21 = vld [vmem:[%s930_s5 + $0x8] sm:$0xff] (!%p249_p12)  ;;  %v310_v22 = vld [vmem:[%s930_s5] sm:$0xff] (!%p249_p12)  ;;  %v313_v23 = vld [vmem:[%s930_s5 + $0x18] sm:$0xff] (!%p249_p12)  ;;  %s883_s19 = scalar_lea.sflag (!%p249_p12), [#allocation4], %s255_s11  ;;  %s645_s20 = scalar_lea.vmem (!%p249_p12), %s874_s15, 1024 }
  0x23   : > { %v312_v24 = vld [vmem:[%s930_s5 + $0x10] sm:$0xff] (!%p249_p12)  ;;  %v307_v25 = vld [vmem:[%s929_s4 + $0x8] sm:$0xff] (!%p249_p12)  ;;  %v306_v26 = vld [vmem:[%s929_s4] sm:$0xff] (!%p249_p12)  ;;  %p646_p13 = scmp.ne.s32.totalorder (!%p249_p12), %s874_s15, %s645_s20  ;;  %s710_s26 = smov (!%p249_p12), [#allocation3]  }
  0x24   : > { %331 = vperm.xlu1 (!%p249_p12), %644, %v297_v11   ;;  %321 = vperm.xlu0 (!%p249_p12), %643, %v295_v12   ;;  %v309_v27 = vld [vmem:[%s929_s4 + $0x18] sm:$0xff] (!%p249_p12)  ;;  %v308_v28 = vld [vmem:[%s929_s4 + $0x10] sm:$0xff] (!%p249_p12)  ;;  %v286_v37 = vld [vmem:[%s257_s13] sm:$0xff] (!%p249_p12)  ;;  %s649_s28 = sshll.u32 (!%p249_p12), %s710_s26, 4  ;;  %s650_s28 = int_to_ptr.vmem [resolvable:$false] %s649_s28 }
  0x25   : > { %v287_v38 = vld [vmem:[%s257_s13 + $0x8] sm:$0xff] (!%p249_p12)  ;;  %v288_v39 = vld [vmem:[%s257_s13 + $0x10] sm:$0xff] (!%p249_p12)  ;;  %v289_v40 = vld [vmem:[%s257_s13 + $0x18] sm:$0xff] (!%p249_p12)  ;;  %p647_p0 = pnand (!%p249_p12), %p646_p13, %p787_p6  ;;  %s651_s29 = scalar_lea.vmem (!%p249_p12), %s650_s28, 2048 }
  0x26   : > { %v290_v41 = vld [vmem:[%s257_s13 + $0x20] sm:$0xff]  ;;  %v291_v44 = vld [vmem:[%s257_s13 + $0x28] sm:$0xff]  ;;  %v292_v47 = vld [vmem:[%s257_s13 + $0x30] sm:$0xff]  ;;  %p652_p2 = scmp.lt.s32.totalorder %s874_s15, %s650_s28  ;;  %p653_p3 = scmp.lt.s32.totalorder %s651_s29, %s645_s20 }
  0x27   : > { %v293_v48 = vld [vmem:[%s257_s13 + $0x38] sm:$0xff]  ;;  %p648_p1 = pneg %p647_p0 }
  0x28   : > { %349 = vperm.xlu1 %644, %v299_v13   ;;  %344 = vperm.xlu0 %643, %v298_v14   ;;  %p654_p4 = por %p653_p3, %p652_p2 }
  0x2a   : > { %p655_p5 = pnand %p654_p4, %p648_p1 }
  0x2c   : > { %359 = vperm.xlu1 %644, %v301_v15   ;;  %354 = vperm.xlu0 %643, %v300_v16  }
  0x30   : > { %377 = vperm.xlu1 %644, %v303_v17   ;;  %372 = vperm.xlu0 %643, %v302_v18  }
  0x34   : > { %387 = vperm.xlu1 %644, %v305_v19   ;;  %382 = vperm.xlu0 %643, %v304_v20  }
  0x38   : > { %429 = vperm.xlu1 %644, %v311_v21   ;;  %424 = vperm.xlu0 %643, %v310_v22  }
  0x3c   : > { %439 = vperm.xlu1 %644, %v313_v23   ;;  %434 = vperm.xlu0 %643, %v312_v24  }
  0x40   : > { %457 = vperm.xlu1 %644, %v307_v25   ;;  %452 = vperm.xlu0 %643, %v306_v26  }
  0x44   : > { %467 = vperm.xlu1 %644, %v309_v27   ;;  %462 = vperm.xlu0 %643, %v308_v28  }
  0x9f   : > { %v327_v29 = vpop.permute.xlu1 %326  ;;  %v317_v30 = vpop.permute.xlu0 %316 }
  0xa0   : > { %v334_v45 = vmul.f32 %v317_v30, %v286_v37  ;;  %v335_v46 = vmul.f32 %v317_v30, %v287_v38  ;;  %v338_v55 = vmul.f32 %v327_v29, %v290_v41  ;;  %v339_v56 = vmul.f32 %v327_v29, %v291_v44 }
  0xa3   : > { %v332_v31 = vpop.permute.xlu1 %331  ;;  %v322_v32 = vpop.permute.xlu0 %321 }
  0xa4   : > { %v336_v49 = vmul.f32 %v322_v32, %v288_v39  ;;  %v337_v50 = vmul.f32 %v322_v32, %v289_v40  ;;  %v340_v57 = vmul.f32 %v332_v31, %v292_v47  ;;  %v341_v58 = vmul.f32 %v332_v31, %v293_v48 }
  0xa7   : > { %v350_v33 = vpop.permute.xlu1 %349  ;;  %v345_v34 = vpop.permute.xlu0 %344 }
  0xa8   : > { %v364_v51 = vsub.f32 %v336_v49, %v350_v33  ;;  %v365_v52 = vsub.f32 %v337_v50, %v350_v33  ;;  %v362_v53 = vsub.f32 %v334_v45, %v345_v34  ;;  %v363_v54 = vsub.f32 %v335_v46, %v345_v34 }
  0xab   : > { %v360_v35 = vpop.permute.xlu1 %359  ;;  %v355_v36 = vpop.permute.xlu0 %354 }
  0xac   : > { %v368_v1 = vsub.f32 %v340_v57, %v360_v35  ;;  %v369_v2 = vsub.f32 %v341_v58, %v360_v35  ;;  %v366_v3 = vsub.f32 %v338_v55, %v355_v36  ;;  %v367_v4 = vsub.f32 %v339_v56, %v355_v36 }
  0xaf   : > { %v378_v42 = vpop.permute.xlu1 %377  ;;  %v373_v43 = vpop.permute.xlu0 %372 }
  0xb0   : > { %v392_v61 = vmul.f32 %v378_v42, %v364_v51  ;;  %v393_v62 = vmul.f32 %v378_v42, %v365_v52  ;;  %v390_v63 = vmul.f32 %v373_v43, %v362_v53  ;;  %v391_v0 = vmul.f32 %v373_v43, %v363_v54 }
  0xb2   : > { %v587_v11 = vclamps-f32 %v392_v61, 1.0  ;;  %v588_v12 = vclamps-f32 %v393_v62, 1.0  ;;  %v585_v13 = vclamps-f32 %v390_v63, 1.0  ;;  %v586_v14 = vclamps-f32 %v391_v0, 1.0 }
  0xb3   : > { %v388_v59 = vpop.permute.xlu1 %387  ;;  %v383_v60 = vpop.permute.xlu0 %382 }
  0xb4   : > { %v396_v5 = vmul.f32 %v388_v59, %v368_v1  ;;  %v397_v6 = vmul.f32 %v388_v59, %v369_v2  ;;  %v394_v7 = vmul.f32 %v383_v60, %v366_v3  ;;  %v395_v8 = vmul.f32 %v383_v60, %v367_v4 }
  0xb5   : > { %v416_v21 = vmul.f32 %v587_v11, %v587_v11  ;;  %v417_v22 = vmul.f32 %v588_v12, %v588_v12  ;;  %v414_v23 = vmul.f32 %v585_v13, %v585_v13  ;;  %v415_v24 = vmul.f32 %v586_v14, %v586_v14 }
  0xb6   : > { %v591_v15 = vclamps-f32 %v396_v5, 1.0  ;;  %v592_v16 = vclamps-f32 %v397_v6, 1.0  ;;  %v589_v17 = vclamps-f32 %v394_v7, 1.0  ;;  %v590_v18 = vclamps-f32 %v395_v8, 1.0 }
  0xb7   : > { %v430_v9 = vpop.permute.xlu1 %429  ;;  %v425_v10 = vpop.permute.xlu0 %424 }
  0xb8   : > { %v444_v25 = vmul.f32 %v430_v9, %v416_v21  ;;  %v445_v26 = vmul.f32 %v430_v9, %v417_v22  ;;  %v442_v27 = vmul.f32 %v425_v10, %v414_v23  ;;  %v443_v28 = vmul.f32 %v425_v10, %v415_v24 }
  0xb9   : > { %v420_v29 = vmul.f32 %v591_v15, %v591_v15  ;;  %v421_v30 = vmul.f32 %v592_v16, %v592_v16  ;;  %v418_v31 = vmul.f32 %v589_v17, %v589_v17  ;;  %v419_v32 = vmul.f32 %v590_v18, %v590_v18 }
  0xbb   : > { %v440_v19 = vpop.permute.xlu1 %439  ;;  %v435_v20 = vpop.permute.xlu0 %434 }
  0xbc   : > { %v448_v39 = vmul.f32 %v440_v19, %v420_v29  ;;  %v449_v40 = vmul.f32 %v440_v19, %v421_v30  ;;  %v446_v41 = vmul.f32 %v435_v20, %v418_v31  ;;  %v447_v42 = vmul.f32 %v435_v20, %v419_v32 }
  0xbf   : > { %v458_v33 = vpop.permute.xlu1 %457  ;;  %v453_v34 = vpop.permute.xlu0 %452 }
  0xc0   : > { %v472_v35 = vsub.f32 %v458_v33, %v444_v25  ;;  %v473_v36 = vsub.f32 %v458_v33, %v445_v26  ;;  %v470_v37 = vsub.f32 %v453_v34, %v442_v27  ;;  %v471_v38 = vsub.f32 %v453_v34, %v443_v28 }
  0xc2   : > { %v480_v43 = vmul.f32 %v587_v11, %v472_v35  ;;  %v481_v44 = vmul.f32 %v588_v12, %v473_v36  ;;  %v478_v45 = vmul.f32 %v585_v13, %v470_v37  ;;  %v479_v46 = vmul.f32 %v586_v14, %v471_v38 }
  0xc3   : > { %v468_v47 = vpop.permute.xlu1 %467  ;;  %v463_v48 = vpop.permute.xlu0 %462 }
  0xc4   : > { %488 = vst [vmem:[%s283_s14 + $0x10] sm:$0xff] %v480_v43  ;;  %489 = vst [vmem:[%s283_s14 + $0x18] sm:$0xff] %v481_v44  ;;  %v476_v49 = vsub.f32 %v468_v47, %v448_v39  ;;  %v477_v50 = vsub.f32 %v468_v47, %v449_v40  ;;  %v474_v51 = vsub.f32 %v463_v48, %v446_v41 }
  0xc5   : > { %486 = vst [vmem:[%s283_s14] sm:$0xff] %v478_v45  ;;  %487 = vst [vmem:[%s283_s14 + $0x8] sm:$0xff] %v479_v46  ;;  %v475_v52 = vsub.f32 %v463_v48, %v447_v42 }
  0xc6   : > { %v484_v53 = vmul.f32 %v591_v15, %v476_v49  ;;  %v485_v54 = vmul.f32 %v592_v16, %v477_v50  ;;  %v482_v55 = vmul.f32 %v589_v17, %v474_v51 }
  0xc7   : > { %v483_v56 = vmul.f32 %v590_v18, %v475_v52 }
  0xc8   : > { %492 = vst [vmem:[%s283_s14 + $0x30] sm:$0xff] %v484_v53  ;;  %493 = vst [vmem:[%s283_s14 + $0x38] sm:$0xff] %v485_v54 }
  0xc9   : > { %490 = vst [vmem:[%s283_s14 + $0x20] sm:$0xff] %v482_v55  ;;  %491 = vst [vmem:[%s283_s14 + $0x28] sm:$0xff] %v483_v56 }
  0xca   : > { %658 = shalt.err (!%p655_p5)
}
  0xcb   : > { %s659_s9 = scalar_lea.hbm %s879_s25, 1024  ;;  %s663_s12 = scalar_lea.hbm %s931_s6, 2048 }
  0xcc   : > { %p660_p7 = scmp.ne.s32.totalorder %s879_s25, %s659_s9  ;;  %p664_p12 = scmp.lt.u32.totalorder %s879_s25, %s931_s6 }
  0xcd   : > { %p665_p13 = scmp.lt.u32.totalorder %s663_s12, %s659_s9  ;;  %p667_p1 = scmp.lt.u32.totalorder %s659_s9, %s879_s25 }
  0xce   : > { %p661_p10 = pnand %p660_p7, %p787_p6 }
  0xcf   : > { %p666_p0 = por %p665_p13, %p664_p12 }
  0xd0   : > { %p662_p11 = pneg %p661_p10 }
  0xd1   : > { %p668_p2 = por %p667_p1, %p666_p0 }
  0xd3   : > { %p669_p3 = pnand %p668_p2, %p662_p11 }
  0xd5   : > { %672 = shalt.err (!%p669_p3)
}
  0xd6   : > { %s711_s16 = smov 256   ;;  %s712_s17 = smov 512  }
  0xd7   : > { %s713_s18 = smov 16  }
  0xd8   : > { %600 = dma.vmem_to_hbm [thread:$0]  (%p787_p6), %s874_s15, 1024, %s879_s25, %s883_s19, %s711_s16, %s712_s17, %s713_s18  }
  0xd9 PF: > { %s523_s20 = sand.u32 1, %s695_s21   ;;  %p603_p4 = pnand %p578_p9, %p791_p8 }
  0xda   : > { %s524_s26 = scalar_lea.sflag [#allocation4], %s523_s20 }
  0xdb   : > { %690 = dma.done.wait (!%p603_p4), %s524_s26, 1024  }
  0xdc   : > { %692 = vsyncadd (!%p603_p4), %s524_s26, 4294966272  ;;  %p16_p5 = scmp.ge.s32.totalorder %s772_s27, 4   ;;  %s934_s21 = smov %s699_s22 }
  0xdd   : > { %s935_s22 = smov %s703_s23  ;;  %s936_s23 = smov %s785_s30 }
  0xde   : > { %s937_s24 = smov %s772_s27  ;;  %18 = sbr.rel (!%p16_p5) target bundleno = 3 (0x3), region = 107 }
  0xe5   :  { %529 = vsyncpa [#allocation4], 1 }
  0xe6   :  { %531 = vsyncpa [#allocation4 + $0x1], 1 }

</bundles_post_ra>
